<compile_context>
chip_gen: v5e
topology: v5e:2x2
jax: 0.10.0
libtpu: 0.0.40
codegen_flags: <defaults>
</compile_context>

<pallas_src>
import functools

import jax
import jax.numpy as jnp
from jax.experimental import pallas as pl
from jax.experimental.pallas import tpu as pltpu


def _round_up(x, m):
    return (x + m - 1) // m * m


def _qil_bert_output_kernel(x_ref, w_ref, b_ref, res_ref, gamma_ref, beta_ref,
                            o_ref, *, eps, mxu_dtype):
    # x_ref:     (TM, K)  activations from the intermediate layer (native dtype)
    # w_ref:     (K, N)   dense weight, pre-transposed + pre-cast to mxu_dtype
    # b_ref:     (1, N)   dense bias
    # res_ref:   (TM, N)  residual (input_tensor)
    # gamma_ref: (1, N)   LayerNorm weight
    # beta_ref:  (1, N)   LayerNorm bias
    # o_ref:     (TM, N)  output tile

    # Dense: y = x @ W^T, computed as (M,K)@(K,N) with bf16 MXU operands and
    # f32 accumulation.  x is cast in-kernel (DMA stays in native dtype).
    x = x_ref[...].astype(mxu_dtype)
    y = jnp.dot(x, w_ref[...], preferred_element_type=jnp.float32)
    y = y + b_ref[...].astype(jnp.float32)

    # Residual add (ln_input_act with identity, quant_mode=False): keep f32.
    y = y + res_ref[...].astype(jnp.float32)

    # LayerNorm over the hidden dim.  Two-pass statistics in f32 (avoids the
    # E[y^2]-E[y]^2 cancellation); the epilogue is VPU/XLU filler under MXU
    # slack at these shapes, so this costs nothing.
    n = y.shape[-1]
    inv_n = 1.0 / n
    mean = jnp.sum(y, axis=-1, keepdims=True) * inv_n
    c = y - mean
    var = jnp.sum(c * c, axis=-1, keepdims=True) * inv_n
    inv_std = jax.lax.rsqrt(var + eps)
    out = c * inv_std
    out = out * gamma_ref[...].astype(jnp.float32) + beta_ref[...].astype(jnp.float32)
    o_ref[...] = out.astype(o_ref.dtype)


def qil_bert_output(hidden_states, dense_weight, dense_bias,
                    input_tensor, ln_weight, ln_bias, *,
                    eps=1e-12, block_rows=512, mxu_dtype=jnp.bfloat16):
    """Pallas implementation of QILBertOutput.forward (quant_mode=False).

    hidden_states: [B, S, K]  (K = intermediate_size)
    dense_weight:  [N, K]     (PyTorch nn.Linear weight layout)
    dense_bias:    [N]
    input_tensor:  [B, S, N]  (N = hidden_size)
    ln_weight:     [N]
    ln_bias:       [N]

    Returns (out [B, S, N], scaling_factor=None, offset=None).
    """
    B, S, K = hidden_states.shape
    N = dense_weight.shape[0]
    M = B * S
    out_dtype = hidden_states.dtype

    x2d = hidden_states.reshape(M, K)
    res2d = input_tensor.reshape(M, N)
    b2d = dense_bias.reshape(1, N)
    g2d = ln_weight.reshape(1, N)
    beta2d = ln_bias.reshape(1, N)

    # Weight: cast to the MXU dtype and pre-transpose to (K, N) once, outside
    # the kernel (do this at param-load time in real serving).
    w_kn = dense_weight.astype(mxu_dtype).T

    # Per-TensorCore VMEM capacity; fall back conservatively (v7x = 64 MiB).
    try:
        vmem_cap = int(pltpu.get_tpu_info().vmem_capacity_bytes)
    except Exception:  # pragma: no cover - defensive fallback
        vmem_cap = 64 << 20
    vmem_budget = int(0.80 * vmem_cap)

    x_isz = jnp.dtype(x2d.dtype).itemsize
    res_isz = jnp.dtype(res2d.dtype).itemsize
    out_isz = jnp.dtype(out_dtype).itemsize
    w_bytes_total = K * N * jnp.dtype(mxu_dtype).itemsize

    def working_set(tm):
        # Resident weight + double-buffered x / residual / output tiles +
        # small (1, N) params, with ~30% slack for Mosaic-internal scratch.
        tiles = 2 * tm * K * x_isz + 2 * tm * N * res_isz + 2 * tm * N * out_isz
        return int(1.3 * (w_bytes_total + tiles + 8 * N * 4))

    # Row tile: big enough to amortize per-grid-step overhead, 16-aligned
    # (covers f32/bf16 sublane packing).  Keep >= 4 grid steps when M allows
    # (pipelining / megacore sharding), and shrink until the working set fits
    # the chip's VMEM budget.
    tm = max(16, min(_round_up(block_rows, 16), _round_up(M, 16)))
    if M >= 4 * 16:
        tm = min(tm, max(16, _round_up(pl.cdiv(M, 4), 16)))
    while tm > 16 and working_set(tm) > vmem_budget:
        tm = max(16, _round_up(tm // 2, 16))

    # Ragged M: no wrapper-side pad/crop.  Only the last row-block can be
    # partial; its out-of-range rows are masked on store and all math is
    # row-independent, so garbage in those rows never touches valid output.
    grid = (pl.cdiv(M, tm),)

    vmem_limit = int(min(max(working_set(tm), 32 << 20), int(0.9 * vmem_cap)))

    cost = pl.CostEstimate(
        flops=2 * M * K * N,
        transcendentals=M,  # one rsqrt per row
        bytes_accessed=(M * K * x_isz + w_bytes_total
                        + M * N * res_isz + M * N * out_isz),
    )

    kernel = functools.partial(_qil_bert_output_kernel, eps=eps,
                               mxu_dtype=mxu_dtype)

    out2d = pl.pallas_call(
        kernel,
        out_shape=jax.ShapeDtypeStruct((M, N), out_dtype),
        grid_spec=pltpu.PrefetchScalarGridSpec(
            num_scalar_prefetch=0,
            grid=grid,
            in_specs=[
                pl.BlockSpec((tm, K), lambda i: (i, 0)),   # x tile (pipelined)
                pl.BlockSpec((K, N), lambda i: (0, 0)),    # weight (K,N), resident in VMEM
                pl.BlockSpec((1, N), lambda i: (0, 0)),    # bias, resident
                pl.BlockSpec((tm, N), lambda i: (i, 0)),   # residual tile (pipelined)
                pl.BlockSpec((1, N), lambda i: (0, 0)),    # LN gamma, resident
                pl.BlockSpec((1, N), lambda i: (0, 0)),    # LN beta, resident
            ],
            out_specs=pl.BlockSpec((tm, N), lambda i: (i, 0)),
        ),
        compiler_params=pltpu.CompilerParams(
            dimension_semantics=("parallel",),
            vmem_limit_bytes=vmem_limit),
        cost_estimate=cost,
    )(x2d, w_kn, b2d, res2d, g2d, beta2d)

    # quant_mode=False -> no quantization: scaling factor / offset are None.
    return out2d.reshape(B, S, N), None, None


def _reference(hidden_states, dense_weight, dense_bias,
               input_tensor, ln_weight, ln_bias, eps=1e-12,
               mxu_dtype=jnp.float32):
    # Matches the module math; mxu_dtype controls the matmul-operand precision
    # so we can compare both against the bf16 kernel and against pure f32.
    y = jnp.einsum("bsk,nk->bsn",
                   hidden_states.astype(mxu_dtype),
                   dense_weight.astype(mxu_dtype),
                   preferred_element_type=jnp.float32)
    y = y + dense_bias.astype(jnp.float32)
    y = y + input_tensor.astype(jnp.float32)
    mean = jnp.mean(y, axis=-1, keepdims=True)
    var = jnp.mean((y - mean) ** 2, axis=-1, keepdims=True)
    y = (y - mean) * jax.lax.rsqrt(var + eps)
    return y * ln_weight + ln_bias


if __name__ == "__main__":
    eps = 1e-12
    key = jax.random.PRNGKey(0)

    def make_inputs(B, S, N, K, key):
        k1, k2, k3, k4, k5, k6 = jax.random.split(key, 6)
        hs = jax.random.normal(k1, (B, S, K), dtype=jnp.float32)
        res = jax.random.normal(k2, (B, S, N), dtype=jnp.float32)
        w = jax.random.normal(k3, (N, K), dtype=jnp.float32) * 0.02
        b = jax.random.normal(k4, (N,), dtype=jnp.float32) * 0.02
        g = 1.0 + 0.01 * jax.random.normal(k5, (N,), dtype=jnp.float32)
        beta = 0.01 * jax.random.normal(k6, (N,), dtype=jnp.float32)
        return hs, res, w, b, g, beta

    # Case 1: small BERT-like shapes (batch=2, seq=8, hidden=128, inter=512).
    B, S, N, K = 2, 8, 128, 512
    hs, res, w, b, g, beta = make_inputs(B, S, N, K, key)

    out, out_sf, out_off = qil_bert_output(hs, w, b, res, g, beta, eps=eps)
    out = jax.block_until_ready(out)
    assert out.shape == (B, S, N)
    assert out_sf is None and out_off is None

    ref_bf16 = _reference(hs, w, b, res, g, beta, eps=eps, mxu_dtype=jnp.bfloat16)
    ref_f32 = _reference(hs, w, b, res, g, beta, eps=eps, mxu_dtype=jnp.float32)
    assert jnp.allclose(out, ref_bf16, atol=1e-3, rtol=1e-3), \
        "mismatch vs bf16-matmul reference"
    assert jnp.allclose(out, ref_f32, atol=5e-2, rtol=5e-2), \
        "mismatch vs f32 reference (sanity)"

    # Case 2: ragged M (M=24 not a multiple of the 16-row tile) exercises the
    # masked partial last block (no wrapper pad/crop).
    B2, S2 = 2, 12
    hs2, res2, w2, b2_, g2, beta2 = make_inputs(B2, S2, N, K, jax.random.PRNGKey(1))
    out2, _, _ = qil_bert_output(hs2, w2, b2_, res2, g2, beta2, eps=eps)
    out2 = jax.block_until_ready(out2)
    ref2 = _reference(hs2, w2, b2_, res2, g2, beta2, eps=eps, mxu_dtype=jnp.bfloat16)
    assert out2.shape == (B2, S2, N)
    assert jnp.allclose(out2, ref2, atol=1e-3, rtol=1e-3), \
        "mismatch vs reference (ragged M)"

    print("KERNEL_OK")
</pallas_src>

<mosaic_0001>
module attributes {stable_mosaic.version = 11 : i64} {
  func.func @_qil_bert_output_kernel(%arg0: i32, %arg1: memref<16x512xf32, #tpu.memory_space<vmem>>, %arg2: memref<512x128xbf16, #tpu.memory_space<vmem>>, %arg3: memref<1x128xf32, #tpu.memory_space<vmem>>, %arg4: memref<16x128xf32, #tpu.memory_space<vmem>>, %arg5: memref<1x128xf32, #tpu.memory_space<vmem>>, %arg6: memref<1x128xf32, #tpu.memory_space<vmem>>, %arg7: memref<16x128xf32, #tpu.memory_space<vmem>>) attributes {dimension_semantics = [#tpu.dimension_semantics<parallel>], iteration_bounds = array<i64: 1>, scalar_prefetch = 0 : i64, scratch_operands = 0 : i64, tpu.core_type = #tpu.core_type<tc>, window_params = [{transform_indices = @transform_0, window_bounds = array<i64: 16, 512>}, {pipeline_mode = #tpu.pipeline_mode<synchronous>, transform_indices = @transform_1, window_bounds = array<i64: 512, 128>}, {pipeline_mode = #tpu.pipeline_mode<synchronous>, transform_indices = @transform_2, window_bounds = array<i64: 1, 128>}, {transform_indices = @transform_3, window_bounds = array<i64: 16, 128>}, {pipeline_mode = #tpu.pipeline_mode<synchronous>, transform_indices = @transform_4, window_bounds = array<i64: 1, 128>}, {pipeline_mode = #tpu.pipeline_mode<synchronous>, transform_indices = @transform_5, window_bounds = array<i64: 1, 128>}, {transform_indices = @transform_6, window_bounds = array<i64: 16, 128>}]} {
    %c0 = arith.constant 0 : index
    %c0_0 = arith.constant 0 : index
    %0 = vector.load %arg1[%c0, %c0_0] : memref<16x512xf32, #tpu.memory_space<vmem>>, vector<16x512xf32>
    %1 = arith.truncf %0 : vector<16x512xf32> to vector<16x512xbf16>
    %c0_1 = arith.constant 0 : index
    %c0_2 = arith.constant 0 : index
    %2 = vector.load %arg2[%c0_1, %c0_2] : memref<512x128xbf16, #tpu.memory_space<vmem>>, vector<512x128xbf16>
    %cst = arith.constant dense<0.000000e+00> : vector<16x128xf32>
    %3 = tpu.matmul %1, %2, %cst {dimension_numbers = #tpu.dot_dimension_numbers<[1], [0], [0], [1], [0, 0, 1, 1], [], []>} : vector<16x512xbf16>, vector<512x128xbf16>, vector<16x128xf32> -> vector<16x128xf32>
    %c0_3 = arith.constant 0 : index
    %c0_4 = arith.constant 0 : index
    %4 = vector.load %arg3[%c0_3, %c0_4] : memref<1x128xf32, #tpu.memory_space<vmem>>, vector<1x128xf32>
    %5 = vector.broadcast %4 : vector<1x128xf32> to vector<16x128xf32>
    %6 = arith.addf %3, %5 : vector<16x128xf32>
    %c0_5 = arith.constant 0 : index
    %c0_6 = arith.constant 0 : index
    %7 = vector.load %arg4[%c0_5, %c0_6] : memref<16x128xf32, #tpu.memory_space<vmem>>, vector<16x128xf32>
    %8 = arith.addf %6, %7 : vector<16x128xf32>
    %cst_7 = arith.constant dense<0.000000e+00> : vector<16xf32>
    %9 = vector.multi_reduction <add>, %8, %cst_7 [1] : vector<16x128xf32> to vector<16xf32>
    %10 = vector.shape_cast %9 : vector<16xf32> to vector<16x1xf32>
    %cst_8 = arith.constant 7.812500e-03 : f32
    %11 = vector.broadcast %cst_8 : f32 to vector<16x1xf32>
    %12 = arith.mulf %10, %11 : vector<16x1xf32>
    %13 = vector.broadcast %12 : vector<16x1xf32> to vector<16x128xf32>
    %14 = arith.subf %8, %13 : vector<16x128xf32>
    %15 = arith.mulf %14, %14 : vector<16x128xf32>
    %cst_9 = arith.constant dense<0.000000e+00> : vector<16xf32>
    %16 = vector.multi_reduction <add>, %15, %cst_9 [1] : vector<16x128xf32> to vector<16xf32>
    %17 = vector.shape_cast %16 : vector<16xf32> to vector<16x1xf32>
    %cst_10 = arith.constant 7.812500e-03 : f32
    %18 = vector.broadcast %cst_10 : f32 to vector<16x1xf32>
    %19 = arith.mulf %17, %18 : vector<16x1xf32>
    %cst_11 = arith.constant 9.99999996E-13 : f32
    %20 = vector.broadcast %cst_11 : f32 to vector<16x1xf32>
    %21 = arith.addf %19, %20 : vector<16x1xf32>
    %22 = math.rsqrt %21 : vector<16x1xf32>
    %23 = vector.broadcast %22 : vector<16x1xf32> to vector<16x128xf32>
    %24 = arith.mulf %14, %23 : vector<16x128xf32>
    %c0_12 = arith.constant 0 : index
    %c0_13 = arith.constant 0 : index
    %25 = vector.load %arg5[%c0_12, %c0_13] : memref<1x128xf32, #tpu.memory_space<vmem>>, vector<1x128xf32>
    %26 = vector.broadcast %25 : vector<1x128xf32> to vector<16x128xf32>
    %27 = arith.mulf %24, %26 : vector<16x128xf32>
    %c0_14 = arith.constant 0 : index
    %c0_15 = arith.constant 0 : index
    %28 = vector.load %arg6[%c0_14, %c0_15] : memref<1x128xf32, #tpu.memory_space<vmem>>, vector<1x128xf32>
    %29 = vector.broadcast %28 : vector<1x128xf32> to vector<16x128xf32>
    %30 = arith.addf %27, %29 : vector<16x128xf32>
    %c0_16 = arith.constant 0 : index
    %c0_17 = arith.constant 0 : index
    %31 = vector.load %arg7[%c0_16, %c0_17] : memref<16x128xf32, #tpu.memory_space<vmem>>, vector<16x128xf32>
    tpu.vector_store %arg7[%c0_16, %c0_17], %30 {strides = array<i32>} : memref<16x128xf32, #tpu.memory_space<vmem>>, vector<16x128xf32>,
    return
  }
  func.func @transform_0(%arg0: i32) -> (i32, i32) {
    %c0_i32 = arith.constant 0 : i32
    %c0_i32_0 = arith.constant 0 : i32
    return %arg0, %c0_i32 : i32, i32
  }
  func.func @transform_1(%arg0: i32) -> (i32, i32) {
    %c0_i32 = arith.constant 0 : i32
    %c0_i32_0 = arith.constant 0 : i32
    %c0_i32_1 = arith.constant 0 : i32
    return %c0_i32, %c0_i32_0 : i32, i32
  }
  func.func @transform_2(%arg0: i32) -> (i32, i32) {
    %c0_i32 = arith.constant 0 : i32
    %c0_i32_0 = arith.constant 0 : i32
    %c0_i32_1 = arith.constant 0 : i32
    return %c0_i32, %c0_i32_0 : i32, i32
  }
  func.func @transform_3(%arg0: i32) -> (i32, i32) {
    %c0_i32 = arith.constant 0 : i32
    %c0_i32_0 = arith.constant 0 : i32
    return %arg0, %c0_i32 : i32, i32
  }
  func.func @transform_4(%arg0: i32) -> (i32, i32) {
    %c0_i32 = arith.constant 0 : i32
    %c0_i32_0 = arith.constant 0 : i32
    %c0_i32_1 = arith.constant 0 : i32
    return %c0_i32, %c0_i32_0 : i32, i32
  }
  func.func @transform_5(%arg0: i32) -> (i32, i32) {
    %c0_i32 = arith.constant 0 : i32
    %c0_i32_0 = arith.constant 0 : i32
    %c0_i32_1 = arith.constant 0 : i32
    return %c0_i32, %c0_i32_0 : i32, i32
  }
  func.func @transform_6(%arg0: i32) -> (i32, i32) {
    %c0_i32 = arith.constant 0 : i32
    %c0_i32_0 = arith.constant 0 : i32
    return %arg0, %c0_i32 : i32, i32
  }
}

</mosaic_0001>

<bundles_post_ra>
// kernel: tpu_custom_call.1
= control target key start
LH: loop header
LB: loop body
LE: loop exit
PB: predicated region body
PF: predicated region fallthrough
CT: control target
= control target key end

     0   :  { %11 = vsyncpa [#allocation3], 0  ;;  %s828_s0 = inlined_call_operand.hbm [shape: f32[16,512], index: 0, kind: input, shape index: {}]   ;;  %s829_s1 = inlined_call_operand.hbm [shape: bf16[512,128], index: 1, kind: input, shape index: {}]   ;;  %s830_s2 = inlined_call_operand.vmem [shape: f32[1,128], index: 2, kind: input, shape index: {}]   ;;  %s831_s3 = inlined_call_operand.hbm [shape: f32[16,128], index: 3, kind: input, shape index: {}]   ;;  %s832_s4 = inlined_call_operand.vmem [shape: f32[1,128], index: 4, kind: input, shape index: {}]   ;;  %s833_s5 = inlined_call_operand.vmem [shape: f32[1,128], index: 5, kind: input, shape index: {}]   ;;  %s834_s6 = inlined_call_operand.hbm [shape: f32[16,128], index: 6, kind: output, shape index: {}]  }
   0x1   :  { %12 = vsyncpa [#allocation6], 0  ;;  %s31_s23 = sshll.u32 %s829_s1, 4  ;;  %s32_s23 = int_to_ptr.hbm [resolvable:$true] %s31_s23 }
   0x2   :  { %13 = vsyncpa [#allocation4], 0  ;;  %s756_s24 = smov [#allocation5]   ;;  %s18_s28 = sshll.u32 %s828_s0, 4  ;;  %s19_s28 = int_to_ptr.hbm [resolvable:$true] %s18_s28 }
   0x3   :  { %s33_s25 = sshll.u32 %s756_s24, 4  ;;  %s757_s29 = smov 64   ;;  %s34_s25 = int_to_ptr.vmem [resolvable:$true] %s33_s25 }
   0x4   :  { %s758_s30 = smov 4   ;;  %s759_s7 = smov [#allocation2]  }
   0x5   :  { %39 = dma.hbm_to_vmem [thread:$0]  %s32_s23, 4096, %s34_s25, [#allocation6], %s757_s29, %s757_s29, %s758_s30  }
   0x6   :  { %s20_s8 = sshll.u32 %s759_s7, 4  ;;  %s760_s9 = smov 512   ;;  %s21_s8 = int_to_ptr.vmem [resolvable:$true] %s20_s8 }
   0x7   :  { %s761_s10 = smov 32   ;;  %s46_s12 = sshll.u32 %s831_s3, 4  ;;  %s47_s12 = int_to_ptr.hbm [resolvable:$true] %s46_s12 }
   0x8   :  { %26 = dma.hbm_to_vmem [thread:$0]  %s19_s28, 1024, %s21_s8, [#allocation3], %s760_s9, %s760_s9, %s761_s10  }
   0x9   :  { %s762_s13 = smov [#allocation7]   ;;  %s763_s15 = smov 128  }
   0xa   :  { %s48_s14 = sshll.u32 %s762_s13, 4  ;;  %s764_s0 = smov 8   ;;  %s49_s14 = int_to_ptr.vmem [resolvable:$true] %s48_s14 }
   0xb   :  { %54 = dma.hbm_to_vmem [thread:$0]  %s47_s12, 256, %s49_s14, [#allocation6], %s763_s15, %s763_s15, %s764_s0  }
   0xc   :  { %750 = dma.done.wait [#allocation3], 1024  }
   0xd   :  { %751 = vsyncadd [#allocation3], 4294966272 }
   0xe   :  { %752 = dma.done.wait [#allocation6], 4352  }
   0xf   :  { %753 = vsyncadd [#allocation6], 4294962944  ;;  %v612_v0 = vld [vmem:[#allocation5 + $0x38] sm:$0xff]  ;;  %v611_v4 = vld [vmem:[#allocation5 + $0x30] sm:$0xff]  ;;  %s765_s20 = smov [#allocation8]   ;;  %s463_s23 = sshll.u32 %s834_s6, 4  ;;  %s464_s23 = int_to_ptr.hbm [resolvable:$true] %s463_s23 }
  0x10   :  { %v620_v1 = vld [vmem:[#allocation5 + $0x78] sm:$0xff]  ;;  %343 = vmatpush.bf16.msra.mxu0 %v612_v0  ;;  %v619_v5 = vld [vmem:[#allocation5 + $0x70] sm:$0xff]  ;;  %v610_v8 = vld [vmem:[#allocation5 + $0x28] sm:$0xff] }
  0x11   :  { %v628_v2 = vld [vmem:[#allocation5 + $0xb8] sm:$0xff]  ;;  %357 = vmatpush.bf16.msra.mxu1 %v620_v1  ;;  %v627_v6 = vld [vmem:[#allocation5 + $0xb0] sm:$0xff]  ;;  %v618_v9 = vld [vmem:[#allocation5 + $0x68] sm:$0xff] }
  0x12   :  { %v636_v3 = vld [vmem:[#allocation5 + $0xf8] sm:$0xff]  ;;  %371 = vmatpush.bf16.msra.mxu2 %v628_v2  ;;  %v635_v7 = vld [vmem:[#allocation5 + $0xf0] sm:$0xff]  ;;  %v626_v10 = vld [vmem:[#allocation5 + $0xa8] sm:$0xff] }
  0x13   :  { %385 = vmatpush.bf16.msra.mxu3 %v636_v3  ;;  %v634_v11 = vld [vmem:[#allocation5 + $0xe8] sm:$0xff]  ;;  %v609_v12 = vld [vmem:[#allocation5 + $0x20] sm:$0xff]  ;;  %v608_v16 = vld [vmem:[#allocation5 + $0x18] sm:$0xff] }
  0x14   :  { %344 = vmatpush.bf16.msra.mxu0 %v611_v4  ;;  %v617_v13 = vld [vmem:[#allocation5 + $0x60] sm:$0xff]  ;;  %v616_v17 = vld [vmem:[#allocation5 + $0x58] sm:$0xff]  ;;  %v607_v20 = vld [vmem:[#allocation5 + $0x10] sm:$0xff] }
  0x15   :  { %358 = vmatpush.bf16.msra.mxu1 %v619_v5  ;;  %v625_v14 = vld [vmem:[#allocation5 + $0xa0] sm:$0xff]  ;;  %v624_v18 = vld [vmem:[#allocation5 + $0x98] sm:$0xff]  ;;  %v615_v21 = vld [vmem:[#allocation5 + $0x50] sm:$0xff] }
  0x16   :  { %372 = vmatpush.bf16.msra.mxu2 %v627_v6  ;;  %v633_v15 = vld [vmem:[#allocation5 + $0xe0] sm:$0xff]  ;;  %v632_v19 = vld [vmem:[#allocation5 + $0xd8] sm:$0xff]  ;;  %v623_v22 = vld [vmem:[#allocation5 + $0x90] sm:$0xff] }
  0x17   :  { %386 = vmatpush.bf16.msra.mxu3 %v635_v7  ;;  %v631_v23 = vld [vmem:[#allocation5 + $0xd0] sm:$0xff]  ;;  %v606_v24 = vld [vmem:[#allocation5 + $0x8] sm:$0xff]  ;;  %v605_v28 = vld [vmem:[#allocation5] sm:$0xff] }
  0x18   :  { %345 = vmatpush.bf16.msra.mxu0 %v610_v8  ;;  %v614_v25 = vld [vmem:[#allocation5 + $0x48] sm:$0xff]  ;;  %v613_v29 = vld [vmem:[#allocation5 + $0x40] sm:$0xff]  ;;  %v73_v36 = vld [vmem:[#allocation2 + $0x10] sm:$0xff] }
  0x19   :  { %359 = vmatpush.bf16.msra.mxu1 %v618_v9  ;;  %v622_v26 = vld [vmem:[#allocation5 + $0x88] sm:$0xff]  ;;  %v621_v30 = vld [vmem:[#allocation5 + $0x80] sm:$0xff]  ;;  %v77_v37 = vld [vmem:[#allocation2 + $0x30] sm:$0xff] }
  0x1a   :  { %373 = vmatpush.bf16.msra.mxu2 %v626_v10  ;;  %v630_v27 = vld [vmem:[#allocation5 + $0xc8] sm:$0xff]  ;;  %v629_v31 = vld [vmem:[#allocation5 + $0xc0] sm:$0xff]  ;;  %v74_v38 = vld [vmem:[#allocation2 + $0x18] sm:$0xff]  ;;  %v81_v42 = vpack.c.bf16 %v77_v37, %v73_v36 }
  0x1b   :  { %387 = vmatpush.bf16.msra.mxu3 %v634_v11  ;;  %v71_v32 = vld [vmem:[#allocation2] sm:$0xff]  ;;  %v72_v34 = vld [vmem:[#allocation2 + $0x8] sm:$0xff]  ;;  %v78_v39 = vld [vmem:[#allocation2 + $0x38] sm:$0xff] }
  0x1c   :  { %346 = vmatpush.bf16.msra.mxu0 %v609_v12  ;;  %v75_v33 = vld [vmem:[#allocation2 + $0x20] sm:$0xff]  ;;  %v76_v35 = vld [vmem:[#allocation2 + $0x28] sm:$0xff]  ;;  %v82_v43 = vpack.c.bf16 %v78_v39, %v74_v38 }
  0x1d   :  { %360 = vmatpush.bf16.msra.mxu1 %v617_v13  ;;  %v79_v40 = vpack.c.bf16 %v75_v33, %v71_v32  ;;  %v80_v41 = vpack.c.bf16 %v76_v35, %v72_v34  ;;  %v647_v44 = vld [vmem:[%s830_s2] ss:$0 sm:$0xff]  ;;  %v400_v62 = vld [vmem:[#allocation7 + $0x8] sm:$0xff] }
  0x1e   :  { %374 = vmatpush.bf16.msra.mxu2 %v625_v14  ;;  %v399_v53 = vld [vmem:[#allocation7] sm:$0xff] }
  0x1f   :  { %388 = vmatpush.bf16.msra.mxu3 %v633_v15 }
  0x20   :  { %347 = vmatpush.bf16.msra.mxu0 %v608_v16 }
  0x21   :  { %361 = vmatpush.bf16.msra.mxu1 %v616_v17 }
  0x22   :  { %375 = vmatpush.bf16.msra.mxu2 %v624_v18 }
  0x23   :  { %389 = vmatpush.bf16.msra.mxu3 %v632_v19 }
  0x24   :  { %348 = vmatpush.bf16.msra.mxu0 %v607_v20 }
  0x25   :  { %362 = vmatpush.bf16.msra.mxu1 %v615_v21 }
  0x26   :  { %376 = vmatpush.bf16.msra.mxu2 %v623_v22 }
  0x27   :  { %390 = vmatpush.bf16.msra.mxu3 %v631_v23  ;;  %v648_v23 = vld [vmem:[%s832_s4] ss:$0 sm:$0xff]  ;;  %s461_s4 = sshll.u32 %s765_s20, 4  ;;  %s462_s4 = int_to_ptr.vmem [resolvable:$true] %s461_s4 }
  0x28   :  { %349 = vmatpush.bf16.msra.mxu0 %v606_v24 }
  0x29   :  { %363 = vmatpush.bf16.msra.mxu1 %v614_v25 }
  0x2a   :  { %377 = vmatpush.bf16.msra.mxu2 %v622_v26 }
  0x2b   :  { %391 = vmatpush.bf16.msra.mxu3 %v630_v27  ;;  %v649_v27 = vld [vmem:[%s833_s5] ss:$0 sm:$0xff] }
  0x2c   :  { %350 = vmatpush.bf16.msra.mxu0 %v605_v28 }
  0x2d   :  { %364 = vmatpush.bf16.msra.mxu1 %v613_v29 }
  0x2e   :  { %378 = vmatpush.bf16.msra.mxu2 %v621_v30 }
  0x2f   :  { %392 = vmatpush.bf16.msra.mxu3 %v629_v31  ;;  %351 = vmatmul.bf16.vlgmr.msra.gmra.mxu0 %v79_v40 }
  0x30   :  { %365 = vmatmul.bf16.vlgmr.msra.gmra.mxu1 %v80_v41 }
  0x31   :  { %379 = vmatmul.bf16.vlgmr.msra.gmra.mxu2 %v81_v42 }
  0x32   :  { %393 = vmatmul.bf16.vlgmr.msra.gmra.mxu3 %v82_v43 }
  0xac   :  { %v352_v45 = vpop.f32.mrf.mxu0 }
  0xad   :  { %v353_v46 = vadd.f32 %v647_v44, %v352_v45  ;;  %v366_v47 = vpop.f32.mrf.mxu1 }
  0xaf   :  { %v367_v48 = vadd.f32 %v366_v47, %v353_v46 }
  0xb4   :  { %v380_v49 = vpop.f32.mrf.mxu2  ;;  %v354_v52 = vpop.f32.mrf.mxu0 }
  0xb5   :  { %v394_v50 = vpop.f32.mrf.mxu3  ;;  %v381_v51 = vadd.f32 %v380_v49, %v367_v48  ;;  %v355_v55 = vadd.f32 %v647_v44, %v354_v52  ;;  %v368_v57 = vpop.f32.mrf.mxu1 }
  0xb7   :  { %v395_v54 = vadd.f32 %v394_v50, %v381_v51  ;;  %v369_v58 = vadd.f32 %v368_v57, %v355_v55 }
  0xb9   :  { %v401_v56 = vadd.f32 %v399_v53, %v395_v54 }
  0xbb   :  { %403 = vadd.xlane.f32.xlu0 %v401_v56 }
  0xbc   :  { %v382_v59 = vpop.f32.mrf.mxu2 }
  0xbd   :  { %v383_v60 = vadd.f32 %v382_v59, %v369_v58  ;;  %v396_v61 = vpop.f32.mrf.mxu3 }
  0xbf   :  { %v397_v63 = vadd.f32 %v396_v61, %v383_v60 }
  0xc1   :  { %v402_v0 = vadd.f32 %v400_v62, %v397_v63 }
  0xc3   :  { %405 = vadd.xlane.f32.xlu0 %v402_v0 }
 0x12e   :  { %v404_v1 = vpop.xlane.xlu0 %403 }
 0x12f   :  { %v407_v2 = vmul.f32 0.0078125, %v404_v1 }
 0x131   :  { %v409_v3 = vsub.f32 %v401_v56, %v407_v2 }
 0x133   :  { %v411_v4 = vmul.f32 %v409_v3, %v409_v3 }
 0x135   :  { %413 = vadd.xlane.f32.xlu1 %v411_v4 }
 0x136   :  { %v406_v5 = vpop.xlane.xlu0 %405 }
 0x137   :  { %v408_v6 = vmul.f32 0.0078125, %v406_v5 }
 0x139   :  { %v410_v7 = vsub.f32 %v402_v0, %v408_v6 }
 0x13b   :  { %v412_v8 = vmul.f32 %v410_v7, %v410_v7 }
 0x13d   :  { %415 = vadd.xlane.f32.xlu1 %v412_v8 }
 0x1a8   :  { %v414_v9 = vpop.xlane.xlu1 %413 }
 0x1a9   :  { %v417_v10 = vmul.f32 0.0078125, %v414_v9 }
 0x1ab   :  { %v419_v11 = vadd.f32 1e-12, %v417_v10 }
 0x1ad   :  { %650 = vrsqrt.f32 %v419_v11  ;;  %vm427_vm1 = vweird.f32 %v419_v11 }
 0x1b0   :  { %v416_v12 = vpop.xlane.xlu1 %415 }
 0x1b1   :  { %v418_v13 = vmul.f32 0.0078125, %v416_v12 }
 0x1b3   :  { %v651_v14 = vpop.eup %650  ;;  %v420_v15 = vadd.f32 1e-12, %v418_v13 }
 0x1b4   :  { %v422_v16 = vmul.f32 %v651_v14, %v419_v11  ;;  %vm428_vm0 = vweird.f32 %v651_v14 }
 0x1b5   :  { %652 = vrsqrt.f32 %v420_v15  ;;  %vm429_vm2 = vmor %vm427_vm1, %vm428_vm0  ;;  %vm437_vm4 = vweird.f32 %v420_v15 }
 0x1b6   :  { %v423_v17 = vmul.f32 %v651_v14, %v422_v16 }
 0x1b8   :  { %v424_v18 = vmul.f32 0.5, %v423_v17 }
 0x1ba   :  { %v425_v19 = vsub.f32 1.5, %v424_v18 }
 0x1bb   :  { %v653_v20 = vpop.eup %652 }
 0x1bc   :  { %v426_v21 = vmul.f32 %v651_v14, %v425_v19  ;;  %v432_v22 = vmul.f32 %v653_v20, %v420_v15  ;;  %vm438_vm3 = vweird.f32 %v653_v20 }
 0x1bd   :  { %vm439_vm5 = vmor %vm437_vm4, %vm438_vm3 }
 0x1be   :  { %v430_v24 = vsel %vm429_vm2, %v651_v14, %v426_v21  ;;  %v433_v25 = vmul.f32 %v653_v20, %v432_v22 }
 0x1bf   :  { %v441_v26 = vmul.f32 %v430_v24, %v409_v3 }
 0x1c0   :  { %v434_v28 = vmul.f32 0.5, %v433_v25 }
 0x1c1   :  { %v447_v29 = vmul.f32 %v648_v23, %v441_v26 }
 0x1c2   :  { %v435_v30 = vsub.f32 1.5, %v434_v28 }
 0x1c3   :  { %v453_v31 = vadd.f32 %v649_v27, %v447_v29 }
 0x1c4   :  { %v436_v32 = vmul.f32 %v653_v20, %v435_v30 }
 0x1c5   :  { %455 = vst [vmem:[#allocation8] sm:$0xff] %v453_v31 }
 0x1c6   :  { %v440_v33 = vsel %vm439_vm5, %v653_v20, %v436_v32 }
 0x1c7   :  { %v442_v34 = vmul.f32 %v440_v33, %v410_v7 }
 0x1c9   :  { %v448_v35 = vmul.f32 %v648_v23, %v442_v34 }
 0x1cb   :  { %v454_v36 = vadd.f32 %v649_v27, %v448_v35 }
 0x1cd   :  { %456 = vst [vmem:[#allocation8 + $0x8] sm:$0xff] %v454_v36 }
 0x1ce   :  { %469 = dma.vmem_to_hbm [thread:$0]  %s462_s4, 256, %s464_s23, [#allocation4], %s763_s15, %s763_s15, %s764_s0  }
 0x1cf   :  { %754 = dma.done.wait [#allocation4], 256  }
 0x1d0   :  { %755 = vsyncadd [#allocation4], 4294967040 }
 0x1d1   :  { %474 = vsyncpa [#allocation3], 1 }
 0x1d2   :  { %475 = vsyncpa [#allocation6], 1 }
 0x1d3   :  { %476 = vsyncpa [#allocation4], 1 }

</bundles_post_ra>
